<compile_context>
chip_gen: v7x
topology: tpu7x:2x2x1
jax: 0.10.0
libtpu: 0.0.40
codegen_flags: <defaults>
</compile_context>

<pallas_src>
import numpy as np
import jax
import jax.numpy as jnp
from jax.experimental import pallas as pl
from jax.experimental.pallas import tpu as pltpu

LANE = 128
SUBLANE = 8
BATCH_TILE_CAP = 1024   # rows; keeps per-step VMEM well under the scoped limit


def round_up(n, m):
    return ((n + m - 1) // m) * m


# ----------------------------------------------------------------------------
# Kernel
# ----------------------------------------------------------------------------
def gru1_kernel(x_ref, s_ref, w1_ref, wih_ref, whh_ref, w3_ref, w4_ref, b_ref,
                out_ref, s_out_ref):
    f32 = jnp.float32
    bf16 = jnp.bfloat16

    # Static dims derived from ref shapes.
    hid1p = w1_ref.shape[1]
    hid2p = s_ref.shape[1]
    hid3p = w3_ref.shape[1]
    act_dim = out_ref.shape[1]

    # Static offsets into the packed bias row
    # [b1 | b_gi(r,z pre-summed; n=bih_n) | bhh_n | b3 | b4].
    ob1 = 0
    obgi = ob1 + hid1p
    obhn = obgi + 3 * hid2p
    ob3 = obhn + hid2p
    ob4 = ob3 + hid3p

    x = x_ref[...]          # (tb, obs_dim)  f32
    s = s_ref[...]          # (tb, hid2p)    f32 (padded lanes are zero)

    # fc1 + tanh  (bf16 MXU operands, f32 accumulation & activation)
    h1 = jnp.tanh(
        jnp.dot(x.astype(bf16), w1_ref[...], preferred_element_type=f32)
        + b_ref[:, ob1:obgi])

    # GRU gates: classic two fused dots over the (r | z | n) gate blocks.
    gi = (jnp.dot(h1.astype(bf16), wih_ref[...], preferred_element_type=f32)
          + b_ref[:, obgi:obgi + 3 * hid2p])
    gh = jnp.dot(s.astype(bf16), whh_ref[...], preferred_element_type=f32)

    r = jax.nn.sigmoid(gi[:, 0:hid2p] + gh[:, 0:hid2p])
    z = jax.nn.sigmoid(gi[:, hid2p:2 * hid2p] + gh[:, hid2p:2 * hid2p])
    n = jnp.tanh(gi[:, 2 * hid2p:3 * hid2p]
                 + r * (gh[:, 2 * hid2p:3 * hid2p]
                        + b_ref[:, obhn:obhn + hid2p]))
    # Padded lanes: gi_n=gh_n=bhh_n=0 -> n=0, and s=0 there, so h_new stays 0.
    h_new = (1.0 - z) * n + z * s
    s_out_ref[...] = h_new

    # fc3 + tanh, fc4
    h3 = jnp.tanh(
        jnp.dot(h_new.astype(bf16), w3_ref[...], preferred_element_type=f32)
        + b_ref[:, ob3:ob3 + hid3p])
    out_ref[...] = (
        jnp.dot(h3.astype(bf16), w4_ref[...], preferred_element_type=f32)
        + b_ref[:, ob4:ob4 + act_dim])


# ----------------------------------------------------------------------------
# Parameters (logical, unpadded — mirrors the PyTorch module layout)
# ----------------------------------------------------------------------------
def make_params(key, obs_dim, act_dim,
                input_network_scale=10, output_network_scale=10):
    hid1 = obs_dim * input_network_scale
    hid3 = act_dim * output_network_scale
    hid2 = int(np.sqrt(hid1 * hid3))
    logvar_speed = 10 * hid3 // 48

    ks = jax.random.split(key, 10)

    def lin(kw, kb, fan_in, fan_out):
        bound = 1.0 / np.sqrt(fan_in)
        w = jax.random.uniform(kw, (fan_in, fan_out), jnp.float32, -bound, bound)
        b = jax.random.uniform(kb, (1, fan_out), jnp.float32, -bound, bound)
        return w, b

    w1, b1 = lin(ks[0], ks[1], obs_dim, hid1)
    # GRUCell weights stored transposed, gate order (r, z, n) concatenated on cols.
    bound = 1.0 / np.sqrt(hid2)
    wih = jax.random.uniform(ks[2], (hid1, 3 * hid2), jnp.float32, -bound, bound)
    bih = jax.random.uniform(ks[3], (1, 3 * hid2), jnp.float32, -bound, bound)
    whh = jax.random.uniform(ks[4], (hid2, 3 * hid2), jnp.float32, -bound, bound)
    bhh = jax.random.uniform(ks[5], (1, 3 * hid2), jnp.float32, -bound, bound)
    w3, b3 = lin(ks[6], ks[7], hid2, hid3)
    w4, b4 = lin(ks[8], ks[9], hid3, act_dim)
    log_vars = jnp.zeros((logvar_speed, act_dim), jnp.float32)

    return dict(w1=w1, b1=b1, wih=wih, bih=bih, whh=whh, bhh=bhh,
                w3=w3, b3=b3, w4=w4, b4=b4, log_vars=log_vars,
                hid1=hid1, hid2=hid2, hid3=hid3)


# ----------------------------------------------------------------------------
# One-time packing: lane-pad hidden dims, gate-block the GRU weights,
# cast weights to bf16, pack biases, hoist the log_vars reduction.
# ----------------------------------------------------------------------------
def pack_params(params):
    obs_dim = params["w1"].shape[0]
    act_dim = params["w4"].shape[1]
    hid1, hid2, hid3 = params["hid1"], params["hid2"], params["hid3"]
    hid1p = round_up(hid1, LANE)
    hid2p = round_up(hid2, LANE)
    hid3p = round_up(hid3, LANE)

    wdt = jnp.bfloat16   # resident weights in bf16 (half VMEM, native MXU dtype)

    def pad2(a, r, c):
        return jnp.pad(a, ((0, r - a.shape[0]), (0, c - a.shape[1])))

    def pad1(v, n):
        return jnp.pad(v, (0, n - v.shape[0]))

    wih, bih = params["wih"], params["bih"][0]
    whh, bhh = params["whh"], params["bhh"][0]

    # (r | z | n) gate blocks, each gate zero-padded to hid2p columns.
    def gate_pack(w, rows_p):
        blocks = [pad2(w[:, g * hid2:(g + 1) * hid2], rows_p, hid2p)
                  for g in range(3)]
        return jnp.concatenate(blocks, axis=1)

    w1 = pad2(params["w1"], obs_dim, hid1p).astype(wdt)       # (obs_dim, hid1p)
    wih3 = gate_pack(wih, hid1p).astype(wdt)                  # (hid1p, 3*hid2p)
    whh3 = gate_pack(whh, hid2p).astype(wdt)                  # (hid2p, 3*hid2p)
    w3 = pad2(params["w3"], hid2p, hid3p).astype(wdt)         # (hid2p, hid3p)
    w4 = pad2(params["w4"], hid3p, act_dim).astype(wdt)       # (hid3p, act_dim)

    # Packed bias row (f32): [b1 | b_gi(r+hh, z+hh, n=ih) | bhh_n | b3 | b4].
    b1 = pad1(params["b1"][0], hid1p)
    b_gi = jnp.concatenate([
        pad1(bih[0:hid2] + bhh[0:hid2], hid2p),
        pad1(bih[hid2:2 * hid2] + bhh[hid2:2 * hid2], hid2p),
        pad1(bih[2 * hid2:3 * hid2], hid2p)])
    b_hn = pad1(bhh[2 * hid2:3 * hid2], hid2p)
    b3 = pad1(params["b3"][0], hid3p)
    b4 = params["b4"][0]                                      # length act_dim
    b_pack = jnp.concatenate([b1, b_gi, b_hn, b3, b4])[None, :].astype(jnp.float32)

    # Hoisted, params-only reduction.
    log_vars_out = jnp.sum(params["log_vars"], axis=0) - 1.0

    return dict(w1=w1, wih3=wih3, whh3=whh3, w3=w3, w4=w4, b_pack=b_pack,
                log_vars_out=log_vars_out,
                dims=dict(obs_dim=obs_dim, act_dim=act_dim,
                          hid1=hid1, hid2=hid2, hid3=hid3,
                          hid1p=hid1p, hid2p=hid2p, hid3p=hid3p))


# ----------------------------------------------------------------------------
# Batch tiling: evenly cover B, cap tile size, prefer >=2 grid steps (v7x
# megacore) once the batch is big enough to split.
# ----------------------------------------------------------------------------
def _choose_batch_tiling(B, cap=BATCH_TILE_CAP):
    n_tiles = max(1, pl.cdiv(B, cap))
    if n_tiles == 1 and B >= 2 * SUBLANE:
        n_tiles = 2   # split across v7x's two TCs; ~0.35us cost on v5e/v6e
    tile_b = round_up(pl.cdiv(B, n_tiles), SUBLANE)
    Bp = tile_b * n_tiles
    return tile_b, Bp


# ----------------------------------------------------------------------------
# Wrapper
# ----------------------------------------------------------------------------
def gru1_forward(vector_obs, states, packed):
    d = packed["dims"]
    B = vector_obs.shape[0]
    obs_dim, act_dim, hid2 = d["obs_dim"], d["act_dim"], d["hid2"]
    hid2p = d["hid2p"]

    tile_b, Bp = _choose_batch_tiling(B)

    x_in = vector_obs.astype(jnp.float32)
    if Bp != B:
        x_in = jnp.pad(x_in, ((0, Bp - B), (0, 0)))
    # State is lane-padded with zeros; those columns provably stay zero inside
    # the kernel, so persistent-state callers may keep the padded state and
    # skip this pad / the return-slice entirely.
    s_in = jnp.pad(states.astype(jnp.float32),
                   ((0, Bp - B), (0, hid2p - hid2)))

    w1, wih3, whh3, w3, w4, b_pack = (packed["w1"], packed["wih3"],
                                      packed["whh3"], packed["w3"],
                                      packed["w4"], packed["b_pack"])

    def bspec(cols):
        return pl.BlockSpec((tile_b, cols), lambda i: (i, 0))

    def cspec(a):  # VMEM-resident constant (weights / biases)
        return pl.BlockSpec(a.shape, lambda i: (0, 0))

    out, s_new_p = pl.pallas_call(
        gru1_kernel,
        out_shape=(jax.ShapeDtypeStruct((Bp, act_dim), jnp.float32),
                   jax.ShapeDtypeStruct((Bp, hid2p), jnp.float32)),
        grid=(Bp // tile_b,),
        in_specs=[bspec(obs_dim),          # x   (unpadded lanes)
                  bspec(hid2p),            # s   (zero lane-padded)
                  cspec(w1), cspec(wih3), cspec(whh3), cspec(w3), cspec(w4),
                  cspec(b_pack)],
        out_specs=(bspec(act_dim),         # out (unpadded lanes)
                   bspec(hid2p)),          # new state
        # Write the new recurrent state into the (fresh, padded) state buffer.
        input_output_aliases={1: 1},
        compiler_params=pltpu.CompilerParams(
            dimension_semantics=("parallel",),
            vmem_limit_bytes=32 * 1024 * 1024),
    )(x_in, s_in, w1, wih3, whh3, w3, w4, b_pack)

    return (out[:B], packed["log_vars_out"], s_new_p[:B, :hid2])


# ----------------------------------------------------------------------------
# Pure-JAX reference (unpadded, f32) for correctness checking
# ----------------------------------------------------------------------------
def gru1_reference(x, s, p):
    hp = jax.lax.Precision.HIGHEST
    dot = lambda a, b: jnp.dot(a, b, precision=hp)
    h1 = jnp.tanh(dot(x, p["w1"]) + p["b1"])
    gi = dot(h1, p["wih"]) + p["bih"]
    gh = dot(s, p["whh"]) + p["bhh"]
    H = s.shape[1]
    r = jax.nn.sigmoid(gi[:, 0:H] + gh[:, 0:H])
    z = jax.nn.sigmoid(gi[:, H:2 * H] + gh[:, H:2 * H])
    n = jnp.tanh(gi[:, 2 * H:3 * H] + r * gh[:, 2 * H:3 * H])
    h_new = (1.0 - z) * n + z * s
    h3 = jnp.tanh(dot(h_new, p["w3"]) + p["b3"])
    out = dot(h3, p["w4"]) + p["b4"]
    logv = jnp.sum(p["log_vars"], axis=0) - 1.0
    return out, logv, h_new


if __name__ == "__main__":
    obs_dim = 8
    act_dim = 4
    B = 2

    key = jax.random.PRNGKey(0)
    kp, kx = jax.random.split(key, 2)
    params = make_params(kp, obs_dim, act_dim)
    hid2 = params["hid2"]

    vector_obs = jax.random.normal(kx, (B, obs_dim), jnp.float32)
    # initial_state in the module is zeros((1, hid2)); broadcast to batch.
    states = jnp.zeros((B, hid2), jnp.float32)

    packed = pack_params(params)

    # Step 1 (zero initial state).
    out, log_vars, s_new = gru1_forward(vector_obs, states, packed)
    jax.block_until_ready((out, log_vars, s_new))

    ref_out, ref_logv, ref_s = gru1_reference(vector_obs, states, params)
    # bf16 MXU operands vs. f32 HIGHEST reference -> loosened tolerance.
    np.testing.assert_allclose(np.asarray(out), np.asarray(ref_out),
                               rtol=1e-2, atol=1e-2)
    np.testing.assert_allclose(np.asarray(s_new), np.asarray(ref_s),
                               rtol=1e-2, atol=1e-2)
    np.testing.assert_allclose(np.asarray(log_vars), np.asarray(ref_logv),
                               rtol=1e-6, atol=1e-6)

    # Step 2: feed the recurrent state back (exercises the s-dependent gate
    # path and the z*s carry).
    out2, _, s_new2 = gru1_forward(vector_obs, s_new, packed)
    jax.block_until_ready((out2, s_new2))
    ref_out2, _, ref_s2 = gru1_reference(vector_obs, ref_s, params)
    np.testing.assert_allclose(np.asarray(out2), np.asarray(ref_out2),
                               rtol=2e-2, atol=2e-2)
    np.testing.assert_allclose(np.asarray(s_new2), np.asarray(ref_s2),
                               rtol=2e-2, atol=2e-2)

    assert out.shape == (B, act_dim)
    assert log_vars.shape == (act_dim,)
    assert s_new.shape == (B, hid2)
    print("KERNEL_OK")
</pallas_src>

<mosaic_0001>
module attributes {stable_mosaic.version = 11 : i64} {
  func.func @gru1_kernel(%arg0: i32, %arg1: memref<8x8xf32, #tpu.memory_space<vmem>>, %arg2: memref<8x128xf32, #tpu.memory_space<vmem>>, %arg3: memref<8x128xbf16, #tpu.memory_space<vmem>>, %arg4: memref<128x384xbf16, #tpu.memory_space<vmem>>, %arg5: memref<128x384xbf16, #tpu.memory_space<vmem>>, %arg6: memref<128x128xbf16, #tpu.memory_space<vmem>>, %arg7: memref<128x4xbf16, #tpu.memory_space<vmem>>, %arg8: memref<1x772xf32, #tpu.memory_space<vmem>>, %arg9: memref<8x4xf32, #tpu.memory_space<vmem>>, %arg10: memref<8x128xf32, #tpu.memory_space<vmem>>) attributes {dimension_semantics = [#tpu.dimension_semantics<parallel>], iteration_bounds = array<i64: 1>, scalar_prefetch = 0 : i64, scratch_operands = 0 : i64, tpu.core_type = #tpu.core_type<tc>, window_params = [{transform_indices = @transform_0, window_bounds = array<i64: 8, 8>}, {transform_indices = @transform_1, window_bounds = array<i64: 8, 128>}, {pipeline_mode = #tpu.pipeline_mode<synchronous>, transform_indices = @transform_2, window_bounds = array<i64: 8, 128>}, {pipeline_mode = #tpu.pipeline_mode<synchronous>, transform_indices = @transform_3, window_bounds = array<i64: 128, 384>}, {pipeline_mode = #tpu.pipeline_mode<synchronous>, transform_indices = @transform_4, window_bounds = array<i64: 128, 384>}, {pipeline_mode = #tpu.pipeline_mode<synchronous>, transform_indices = @transform_5, window_bounds = array<i64: 128, 128>}, {pipeline_mode = #tpu.pipeline_mode<synchronous>, transform_indices = @transform_6, window_bounds = array<i64: 128, 4>}, {pipeline_mode = #tpu.pipeline_mode<synchronous>, transform_indices = @transform_7, window_bounds = array<i64: 1, 772>}, {transform_indices = @transform_8, window_bounds = array<i64: 8, 4>}, {transform_indices = @transform_9, window_bounds = array<i64: 8, 128>}]} {
    %c0 = arith.constant 0 : index
    %c0_0 = arith.constant 0 : index
    %0 = vector.load %arg1[%c0, %c0_0] : memref<8x8xf32, #tpu.memory_space<vmem>>, vector<8x8xf32>
    %c0_1 = arith.constant 0 : index
    %c0_2 = arith.constant 0 : index
    %1 = vector.load %arg2[%c0_1, %c0_2] : memref<8x128xf32, #tpu.memory_space<vmem>>, vector<8x128xf32>
    %2 = arith.truncf %0 : vector<8x8xf32> to vector<8x8xbf16>
    %c0_3 = arith.constant 0 : index
    %c0_4 = arith.constant 0 : index
    %3 = vector.load %arg3[%c0_3, %c0_4] : memref<8x128xbf16, #tpu.memory_space<vmem>>, vector<8x128xbf16>
    %cst = arith.constant dense<0.000000e+00> : vector<8x128xf32>
    %4 = tpu.matmul %2, %3, %cst {dimension_numbers = #tpu.dot_dimension_numbers<[1], [0], [0], [1], [0, 0, 1, 1], [], []>} : vector<8x8xbf16>, vector<8x128xbf16>, vector<8x128xf32> -> vector<8x128xf32>
    %c0_5 = arith.constant 0 : index
    %c0_6 = arith.constant 0 : index
    %5 = vector.load %arg8[%c0_5, %c0_6] : memref<1x772xf32, #tpu.memory_space<vmem>>, vector<1x128xf32>
    %6 = vector.broadcast %5 : vector<1x128xf32> to vector<8x128xf32>
    %7 = arith.addf %4, %6 : vector<8x128xf32>
    %8 = math.tanh %7 : vector<8x128xf32>
    %9 = arith.truncf %8 : vector<8x128xf32> to vector<8x128xbf16>
    %c0_7 = arith.constant 0 : index
    %c0_8 = arith.constant 0 : index
    %10 = vector.load %arg4[%c0_7, %c0_8] : memref<128x384xbf16, #tpu.memory_space<vmem>>, vector<128x384xbf16>
    %cst_9 = arith.constant dense<0.000000e+00> : vector<8x384xf32>
    %11 = tpu.matmul %9, %10, %cst_9 {dimension_numbers = #tpu.dot_dimension_numbers<[1], [0], [0], [1], [0, 0, 1, 1], [], []>} : vector<8x128xbf16>, vector<128x384xbf16>, vector<8x384xf32> -> vector<8x384xf32>
    %c0_10 = arith.constant 0 : index
    %c128 = arith.constant 128 : index
    %12 = vector.load %arg8[%c0_10, %c128] : memref<1x772xf32, #tpu.memory_space<vmem>>, vector<1x384xf32>
    %13 = vector.broadcast %12 : vector<1x384xf32> to vector<8x384xf32>
    %14 = arith.addf %11, %13 : vector<8x384xf32>
    %15 = arith.truncf %1 : vector<8x128xf32> to vector<8x128xbf16>
    %c0_11 = arith.constant 0 : index
    %c0_12 = arith.constant 0 : index
    %16 = vector.load %arg5[%c0_11, %c0_12] : memref<128x384xbf16, #tpu.memory_space<vmem>>, vector<128x384xbf16>
    %cst_13 = arith.constant dense<0.000000e+00> : vector<8x384xf32>
    %17 = tpu.matmul %15, %16, %cst_13 {dimension_numbers = #tpu.dot_dimension_numbers<[1], [0], [0], [1], [0, 0, 1, 1], [], []>} : vector<8x128xbf16>, vector<128x384xbf16>, vector<8x384xf32> -> vector<8x384xf32>
    %18 = vector.extract_strided_slice %14 {offsets = [0, 0], sizes = [8, 128], strides = [1, 1]} : vector<8x384xf32> to vector<8x128xf32>
    %19 = vector.extract_strided_slice %17 {offsets = [0, 0], sizes = [8, 128], strides = [1, 1]} : vector<8x384xf32> to vector<8x128xf32>
    %20 = arith.addf %18, %19 : vector<8x128xf32>
    %21 = arith.negf %20 : vector<8x128xf32>
    %22 = math.exp %21 : vector<8x128xf32>
    %cst_14 = arith.constant 1.000000e+00 : f32
    %23 = vector.broadcast %cst_14 : f32 to vector<8x128xf32>
    %24 = arith.addf %23, %22 : vector<8x128xf32>
    %25 = arith.divf %23, %24 : vector<8x128xf32>
    %26 = vector.extract_strided_slice %14 {offsets = [0, 128], sizes = [8, 128], strides = [1, 1]} : vector<8x384xf32> to vector<8x128xf32>
    %27 = vector.extract_strided_slice %17 {offsets = [0, 128], sizes = [8, 128], strides = [1, 1]} : vector<8x384xf32> to vector<8x128xf32>
    %28 = arith.addf %26, %27 : vector<8x128xf32>
    %29 = arith.negf %28 : vector<8x128xf32>
    %30 = math.exp %29 : vector<8x128xf32>
    %cst_15 = arith.constant 1.000000e+00 : f32
    %31 = vector.broadcast %cst_15 : f32 to vector<8x128xf32>
    %32 = arith.addf %31, %30 : vector<8x128xf32>
    %33 = arith.divf %31, %32 : vector<8x128xf32>
    %34 = vector.extract_strided_slice %14 {offsets = [0, 256], sizes = [8, 128], strides = [1, 1]} : vector<8x384xf32> to vector<8x128xf32>
    %35 = vector.extract_strided_slice %17 {offsets = [0, 256], sizes = [8, 128], strides = [1, 1]} : vector<8x384xf32> to vector<8x128xf32>
    %c0_16 = arith.constant 0 : index
    %c512 = arith.constant 512 : index
    %36 = vector.load %arg8[%c0_16, %c512] : memref<1x772xf32, #tpu.memory_space<vmem>>, vector<1x128xf32>
    %37 = vector.broadcast %36 : vector<1x128xf32> to vector<8x128xf32>
    %38 = arith.addf %35, %37 : vector<8x128xf32>
    %39 = arith.mulf %25, %38 : vector<8x128xf32>
    %40 = arith.addf %34, %39 : vector<8x128xf32>
    %41 = math.tanh %40 : vector<8x128xf32>
    %cst_17 = arith.constant 1.000000e+00 : f32
    %42 = vector.broadcast %cst_17 : f32 to vector<8x128xf32>
    %43 = arith.subf %42, %33 : vector<8x128xf32>
    %44 = arith.mulf %43, %41 : vector<8x128xf32>
    %45 = arith.mulf %33, %1 : vector<8x128xf32>
    %46 = arith.addf %44, %45 : vector<8x128xf32>
    %c0_18 = arith.constant 0 : index
    %c0_19 = arith.constant 0 : index
    %47 = vector.load %arg10[%c0_18, %c0_19] : memref<8x128xf32, #tpu.memory_space<vmem>>, vector<8x128xf32>
    tpu.vector_store %arg10[%c0_18, %c0_19], %46 {strides = array<i32>} : memref<8x128xf32, #tpu.memory_space<vmem>>, vector<8x128xf32>,
    %48 = arith.truncf %46 : vector<8x128xf32> to vector<8x128xbf16>
    %c0_20 = arith.constant 0 : index
    %c0_21 = arith.constant 0 : index
    %49 = vector.load %arg6[%c0_20, %c0_21] : memref<128x128xbf16, #tpu.memory_space<vmem>>, vector<128x128xbf16>
    %cst_22 = arith.constant dense<0.000000e+00> : vector<8x128xf32>
    %50 = tpu.matmul %48, %49, %cst_22 {dimension_numbers = #tpu.dot_dimension_numbers<[1], [0], [0], [1], [0, 0, 1, 1], [], []>} : vector<8x128xbf16>, vector<128x128xbf16>, vector<8x128xf32> -> vector<8x128xf32>
    %c0_23 = arith.constant 0 : index
    %c640 = arith.constant 640 : index
    %51 = vector.load %arg8[%c0_23, %c640] : memref<1x772xf32, #tpu.memory_space<vmem>>, vector<1x128xf32>
    %52 = vector.broadcast %51 : vector<1x128xf32> to vector<8x128xf32>
    %53 = arith.addf %50, %52 : vector<8x128xf32>
    %54 = math.tanh %53 : vector<8x128xf32>
    %55 = arith.truncf %54 : vector<8x128xf32> to vector<8x128xbf16>
    %c0_24 = arith.constant 0 : index
    %c0_25 = arith.constant 0 : index
    %56 = vector.load %arg7[%c0_24, %c0_25] : memref<128x4xbf16, #tpu.memory_space<vmem>>, vector<128x4xbf16>
    %cst_26 = arith.constant dense<0.000000e+00> : vector<8x4xf32>
    %57 = tpu.matmul %55, %56, %cst_26 {dimension_numbers = #tpu.dot_dimension_numbers<[1], [0], [0], [1], [0, 0, 1, 1], [], []>} : vector<8x128xbf16>, vector<128x4xbf16>, vector<8x4xf32> -> vector<8x4xf32>
    %c0_27 = arith.constant 0 : index
    %c768 = arith.constant 768 : index
    %58 = vector.load %arg8[%c0_27, %c768] : memref<1x772xf32, #tpu.memory_space<vmem>>, vector<1x4xf32>
    %59 = vector.broadcast %58 : vector<1x4xf32> to vector<8x4xf32>
    %60 = arith.addf %57, %59 : vector<8x4xf32>
    %c0_28 = arith.constant 0 : index
    %c0_29 = arith.constant 0 : index
    %61 = vector.load %arg9[%c0_28, %c0_29] : memref<8x4xf32, #tpu.memory_space<vmem>>, vector<8x4xf32>
    tpu.vector_store %arg9[%c0_28, %c0_29], %60 {strides = array<i32>} : memref<8x4xf32, #tpu.memory_space<vmem>>, vector<8x4xf32>,
    return
  }
  func.func @transform_0(%arg0: i32) -> (i32, i32) {
    %c0_i32 = arith.constant 0 : i32
    %c0_i32_0 = arith.constant 0 : i32
    return %arg0, %c0_i32 : i32, i32
  }
  func.func @transform_1(%arg0: i32) -> (i32, i32) {
    %c0_i32 = arith.constant 0 : i32
    %c0_i32_0 = arith.constant 0 : i32
    return %arg0, %c0_i32 : i32, i32
  }
  func.func @transform_2(%arg0: i32) -> (i32, i32) {
    %c0_i32 = arith.constant 0 : i32
    %c0_i32_0 = arith.constant 0 : i32
    %c0_i32_1 = arith.constant 0 : i32
    return %c0_i32, %c0_i32_0 : i32, i32
  }
  func.func @transform_3(%arg0: i32) -> (i32, i32) {
    %c0_i32 = arith.constant 0 : i32
    %c0_i32_0 = arith.constant 0 : i32
    %c0_i32_1 = arith.constant 0 : i32
    return %c0_i32, %c0_i32_0 : i32, i32
  }
  func.func @transform_4(%arg0: i32) -> (i32, i32) {
    %c0_i32 = arith.constant 0 : i32
    %c0_i32_0 = arith.constant 0 : i32
    %c0_i32_1 = arith.constant 0 : i32
    return %c0_i32, %c0_i32_0 : i32, i32
  }
  func.func @transform_5(%arg0: i32) -> (i32, i32) {
    %c0_i32 = arith.constant 0 : i32
    %c0_i32_0 = arith.constant 0 : i32
    %c0_i32_1 = arith.constant 0 : i32
    return %c0_i32, %c0_i32_0 : i32, i32
  }
  func.func @transform_6(%arg0: i32) -> (i32, i32) {
    %c0_i32 = arith.constant 0 : i32
    %c0_i32_0 = arith.constant 0 : i32
    %c0_i32_1 = arith.constant 0 : i32
    return %c0_i32, %c0_i32_0 : i32, i32
  }
  func.func @transform_7(%arg0: i32) -> (i32, i32) {
    %c0_i32 = arith.constant 0 : i32
    %c0_i32_0 = arith.constant 0 : i32
    %c0_i32_1 = arith.constant 0 : i32
    return %c0_i32, %c0_i32_0 : i32, i32
  }
  func.func @transform_8(%arg0: i32) -> (i32, i32) {
    %c0_i32 = arith.constant 0 : i32
    %c0_i32_0 = arith.constant 0 : i32
    return %arg0, %c0_i32 : i32, i32
  }
  func.func @transform_9(%arg0: i32) -> (i32, i32) {
    %c0_i32 = arith.constant 0 : i32
    %c0_i32_0 = arith.constant 0 : i32
    return %arg0, %c0_i32 : i32, i32
  }
}

</mosaic_0001>

<bundles_post_ra>
// kernel: tpu_custom_call.1
= control target key start
LH: loop header
LB: loop body
LE: loop exit
PB: predicated region body
PF: predicated region fallthrough
CT: control target
= control target key end

     0   :  { %15 = vsyncpa [#allocation3], 0  ;;  %s1445_s0 = inlined_call_operand.vmem [shape: f32[8,8], index: 0, kind: input, shape index: {}]   ;;  %s1446_s1 = inlined_call_operand.vmem [shape: f32[8,128], index: 1, kind: input, shape index: {}, may-alias: {1,9}]   ;;  %s1447_s2 = inlined_call_operand.vmem [shape: bf16[8,128], index: 2, kind: input, shape index: {}]   ;;  %s1448_s3 = inlined_call_operand.hbm [shape: bf16[128,384], index: 3, kind: input, shape index: {}]   ;;  %s1449_s4 = inlined_call_operand.hbm [shape: bf16[128,384], index: 4, kind: input, shape index: {}]   ;;  %s1450_s5 = inlined_call_operand.vmem [shape: bf16[128,128], index: 5, kind: input, shape index: {}]   ;;  %s1451_s6 = inlined_call_operand.vmem [shape: bf16[128,4], index: 6, kind: input, shape index: {}]   ;;  %s1452_s7 = inlined_call_operand.vmem [shape: f32[1,772], index: 7, kind: input, shape index: {}]   ;;  %s1453_s8 = inlined_call_operand.vmem [shape: f32[8,4], index: 8, kind: output, shape index: {0}]   ;;  %s1454_s9 = inlined_call_operand.vmem [shape: f32[8,128], index: 9, kind: output, shape index: {1}, may-alias: {1,9}]  }
   0x1   :  { %16 = vsyncpa [#allocation5], 0  ;;  %s1238_s30 = smov [#allocation2]   ;;  %s1190_s13 = scalar_lea.hbm %s1448_s3, 3072 }
   0x2   :  { %s28_s10 = sshll.u32 %s1238_s30, 4  ;;  %p1191_p0 = scmp.ne.s32.totalorder %s1448_s3, %s1190_s13  ;;  %s29_s10 = int_to_ptr.vmem [resolvable:$true] %s28_s10 }
   0x3   :  { %p1194_p1 = scmp.lt.u32.totalorder %s1190_s13, %s1448_s3 }
   0x5   :  { %p1196_p2 = pnand %p1194_p1, %p1191_p0 }
   0x7   :  { %1199 = shalt.err (!%p1196_p2)
}
   0x8   :  { %s1200_s18 = scalar_lea.vmem %s29_s10, 3072  ;;  %p1205_p4 = scmp.lt.s32.totalorder %s29_s10, %s29_s10 }
   0x9   :  { %p1201_p3 = scmp.ne.s32.totalorder %s29_s10, %s1200_s18  ;;  %p1206_p5 = scmp.lt.s32.totalorder %s1200_s18, %s1200_s18 }
   0xb   :  { %p1207_p6 = por %p1206_p5, %p1205_p4 }
   0xd   :  { %p1208_p7 = pnand %p1207_p6, %p1201_p3 }
   0xf   :  { %1211 = shalt.err (!%p1208_p7)
}
  0x10   :  { %s1239_s19 = smov 192   ;;  %s1240_s20 = smov 12  }
  0x11   :  { %34 = dma.hbm_to_vmem [thread:$0]  %s1448_s3, 3072, %s29_s10, [#allocation3], %s1239_s19, %s1239_s19, %s1240_s20  }
  0x12   :  { %s1241_s23 = smov [#allocation4]   ;;  %s1212_s27 = scalar_lea.hbm %s1449_s4, 3072 }
  0x13   :  { %s40_s24 = sshll.u32 %s1241_s23, 4  ;;  %p1213_p8 = scmp.ne.s32.totalorder %s1449_s4, %s1212_s27  ;;  %s41_s24 = int_to_ptr.vmem [resolvable:$true] %s40_s24 }
  0x14   :  { %p1216_p9 = scmp.lt.u32.totalorder %s1212_s27, %s1449_s4 }
  0x16   :  { %p1218_p10 = pnand %p1216_p9, %p1213_p8 }
  0x18   :  { %1221 = shalt.err (!%p1218_p10)
}
  0x19   :  { %s1222_s12 = scalar_lea.vmem %s41_s24, 3072  ;;  %p1227_p12 = scmp.lt.s32.totalorder %s41_s24, %s41_s24 }
  0x1a   :  { %p1223_p11 = scmp.ne.s32.totalorder %s41_s24, %s1222_s12  ;;  %p1228_p13 = scmp.lt.s32.totalorder %s1222_s12, %s1222_s12 }
  0x1c   :  { %p1229_p0 = por %p1228_p13, %p1227_p12 }
  0x1e   :  { %p1230_p1 = pnand %p1229_p0, %p1223_p11 }
  0x20   :  { %1233 = shalt.err (!%p1230_p1)
}
  0x21   :  { %46 = dma.hbm_to_vmem [thread:$0]  %s1449_s4, 3072, %s41_s24, [#allocation5], %s1239_s19, %s1239_s19, %s1240_s20  }
  0x22   :  { %1234 = dma.done.wait [#allocation3], 3072  }
  0x23   :  { %1235 = vsyncadd [#allocation3], 4294964224 }
  0x24   :  { %1236 = dma.done.wait [#allocation5], 3072  }
  0x25   :  { %1237 = vsyncadd [#allocation5], 4294964224  ;;  %v1242_v0 = vmov 0.0   ;;  %vm1243_vm0 = vmmov 0   ;;  %vm75_vm1 = vcmask 1043456   ;;  %v60_v2 = vld [vmem:[%s1445_s0] sm:$0xff] }
  0x26   :  { %997 = vmatprep.subr.bf16.mxu0 %v1242_v0  ;;  %999 = vmatprep.mubr.msk.bf16.mxu0 %vm1243_vm0, %v1242_v0  ;;  %v63_v1 = vld [vmem:[%s1447_s2] sm:$0xf]  ;;  %vm71_vm2 = vcmask 64512   ;;  %v62_v4 = vpack.c.bf16 %v60_v2, %v60_v2  ;;  %v1096_v5 = vld [vmem:[#allocation2 + $0x4] ss:$12 sps:$4 sm:$0xff]   ;;  %v1244_v30 = vmov 0  }
  0x27   :  { %v77_v3 = vsel %vm75_vm1, %v63_v1, 0  ;;  %v1098_v6 = vld [vmem:[#allocation2] ss:$12 sps:$4 sm:$0xff]   ;;  %v1099_v7 = vld [vmem:[#allocation2 + $0x8] ss:$12 sps:$4 sm:$0xff]   ;;  %298 = vmatprep.subr.bf16.mxu1 %v1096_v5  ;;  %330 = vmatprep.mubr.bf16.mxu1 %v1244_v30  ;;  %vm876_vm3 = vcmask 31744  }
  0x28   :  { %998 = vmatpush3.bf16.msra.mxu0 %v77_v3  ;;  %v1100_v8 = vld [vmem:[#allocation2 + $0x1c] ss:$12 sps:$4 sm:$0xff]   ;;  %299 = vmatpush1.bf16.msra.mxu1 %v1098_v6  ;;  %v1102_v9 = vld [vmem:[#allocation2 + $0x18] ss:$12 sps:$4 sm:$0xff]   ;;  %v1103_v10 = vld [vmem:[#allocation2 + $0x20] ss:$12 sps:$4 sm:$0xff]  }
  0x29   :  { %1003 = vmatprep.subr.bf16.mxu0 %v1242_v0  ;;  %300 = vmatprep.subr.bf16.mxu1 %v1100_v8  ;;  %v1104_v11 = vld [vmem:[#allocation2 + $0x34] ss:$12 sps:$4 sm:$0xff]   ;;  %v1106_v12 = vld [vmem:[#allocation2 + $0x30] ss:$12 sps:$4 sm:$0xff]   ;;  %v1107_v13 = vld [vmem:[#allocation2 + $0x38] ss:$12 sps:$4 sm:$0xff]  }
  0x2a   :  { %v1108_v14 = vld [vmem:[#allocation2 + $0x4c] ss:$12 sps:$4 sm:$0xff]   ;;  %v1110_v15 = vld [vmem:[#allocation2 + $0x48] ss:$12 sps:$4 sm:$0xff]   ;;  %v1112_v16 = vld [vmem:[#allocation2 + $0x64] ss:$12 sps:$4 sm:$0xff]  }
  0x2b   :  { %1000 = vmatmul.mubr.msk.bf16.vlgmr.msra.gmra.mrb[0].mxu0 %vm71_vm2, %v62_v4  ;;  %v1111_v17 = vld [vmem:[#allocation2 + $0x50] ss:$12 sps:$4 sm:$0xff]   ;;  %v1114_v18 = vld [vmem:[#allocation2 + $0x60] ss:$12 sps:$4 sm:$0xff]   ;;  %v1115_v19 = vld [vmem:[#allocation2 + $0x68] ss:$12 sps:$4 sm:$0xff]  }
  0x2c   :  { %1004 = vmatpush3.bf16.msra.mxu0 %v1099_v7  ;;  %1019 = vmatprep.mubr.msk.bf16.mxu0 %vm1243_vm0, %v1242_v0  ;;  %v1116_v20 = vld [vmem:[#allocation2 + $0x7c] ss:$12 sps:$4 sm:$0xff]   ;;  %v1118_v21 = vld [vmem:[#allocation2 + $0x78] ss:$12 sps:$4 sm:$0xff]   ;;  %v1119_v22 = vld [vmem:[#allocation2 + $0x80] ss:$12 sps:$4 sm:$0xff]  }
  0x2d   :  { %1005 = vmatprep.subr.bf16.mxu0 %v1242_v0  ;;  %301 = vmatpush1.bf16.msra.mxu1 %v1102_v9  ;;  %v1120_v23 = vld [vmem:[#allocation2 + $0x94] ss:$12 sps:$4 sm:$0xff]   ;;  %v1122_v24 = vld [vmem:[#allocation2 + $0x90] ss:$12 sps:$4 sm:$0xff]   ;;  %v1123_v25 = vld [vmem:[#allocation2 + $0x98] ss:$12 sps:$4 sm:$0xff]  }
  0x2e   :  { %302 = vmatprep.subr.bf16.mxu1 %v1104_v11  ;;  %v1124_v26 = vld [vmem:[#allocation2 + $0xac] ss:$12 sps:$4 sm:$0xff]   ;;  %v1126_v27 = vld [vmem:[#allocation2 + $0xa8] ss:$12 sps:$4 sm:$0xff]   ;;  %v1127_v28 = vld [vmem:[#allocation2 + $0xb0] ss:$12 sps:$4 sm:$0xff]  }
  0x2f   :  { %v1130_v29 = vld [vmem:[#allocation4 + $0x4] ss:$12 sps:$4 sm:$0xff]   ;;  %v888_v31 = vld [vmem:[%s1452_s7] ss:$0 sm:$0xff]  ;;  %v1149_v39 = vld [vmem:[#allocation4 + $0x8] ss:$12 sps:$4 sm:$0xff]  }
  0x30   :  { %1006 = vmatpush3.bf16.msra.mxu0 %v1103_v10  ;;  %v1128_v38 = vld [vmem:[#allocation4] ss:$12 sps:$4 sm:$0xff]   ;;  %v1133_v41 = vld [vmem:[#allocation4 + $0x1c] ss:$12 sps:$4 sm:$0xff]   ;;  %v1131_v42 = vld [vmem:[#allocation4 + $0x18] ss:$12 sps:$4 sm:$0xff]  }
  0x31   :  { %1007 = vmatprep.subr.bf16.mxu0 %v1242_v0  ;;  %303 = vmatpush1.bf16.msra.mxu1 %v1106_v12  ;;  %v1153_v43 = vld [vmem:[#allocation4 + $0x20] ss:$12 sps:$4 sm:$0xff]   ;;  %v1134_v45 = vld [vmem:[#allocation4 + $0x30] ss:$12 sps:$4 sm:$0xff]   ;;  %v1154_v46 = vld [vmem:[#allocation4 + $0x38] ss:$12 sps:$4 sm:$0xff]  }
  0x32   :  { %304 = vmatprep.subr.bf16.mxu1 %v1108_v14  ;;  %v1136_v44 = vld [vmem:[#allocation4 + $0x34] ss:$12 sps:$4 sm:$0xff]   ;;  %v1139_v47 = vld [vmem:[#allocation4 + $0x4c] ss:$12 sps:$4 sm:$0xff]   ;;  %v1155_v49 = vld [vmem:[#allocation4 + $0x50] ss:$12 sps:$4 sm:$0xff]  }
  0x33   :  { %v1137_v48 = vld [vmem:[#allocation4 + $0x48] ss:$12 sps:$4 sm:$0xff]   ;;  %v1142_v50 = vld [vmem:[#allocation4 + $0x64] ss:$12 sps:$4 sm:$0xff]   ;;  %v1140_v51 = vld [vmem:[#allocation4 + $0x60] ss:$12 sps:$4 sm:$0xff]  }
  0x34   :  { %1008 = vmatpush3.bf16.msra.mxu0 %v1107_v13  ;;  %v1156_v52 = vld [vmem:[#allocation4 + $0x68] ss:$12 sps:$4 sm:$0xff]   ;;  %v1143_v54 = vld [vmem:[#allocation4 + $0x78] ss:$12 sps:$4 sm:$0xff]   ;;  %v1157_v55 = vld [vmem:[#allocation4 + $0x80] ss:$12 sps:$4 sm:$0xff]  }
  0x35   :  { %1009 = vmatprep.subr.bf16.mxu0 %v1242_v0  ;;  %305 = vmatpush1.bf16.msra.mxu1 %v1110_v15  ;;  %v1145_v53 = vld [vmem:[#allocation4 + $0x7c] ss:$12 sps:$4 sm:$0xff]   ;;  %v1148_v56 = vld [vmem:[#allocation4 + $0x94] ss:$12 sps:$4 sm:$0xff]   ;;  %v1158_v58 = vld [vmem:[#allocation4 + $0x98] ss:$12 sps:$4 sm:$0xff]  }
  0x36   :  { %306 = vmatprep.subr.bf16.mxu1 %v1112_v16  ;;  %v1146_v57 = vld [vmem:[#allocation4 + $0x90] ss:$12 sps:$4 sm:$0xff]   ;;  %v1152_v59 = vld [vmem:[#allocation4 + $0xac] ss:$12 sps:$4 sm:$0xff]   ;;  %v1150_v60 = vld [vmem:[#allocation4 + $0xa8] ss:$12 sps:$4 sm:$0xff]  }
  0x37   :  { %v1353_v61 = vld [vmem:[%s1446_s1] sm:$0xff]  ;;  %v1159_v62 = vld [vmem:[#allocation4 + $0xb0] ss:$12 sps:$4 sm:$0xff]   ;;  %v1161_v2 = vld [vmem:[%s1450_s5 + $0x8] sm:$0xff]  }
  0x38   :  { %1010 = vmatpush3.bf16.msra.mxu0 %v1111_v17  ;;  %v379_v63 = vpack.c.bf16 %v1353_v61, %v1353_v61  ;;  %v1160_v1 = vld [vmem:[%s1450_s5] sm:$0xff]   ;;  %v1162_v3 = vld [vmem:[%s1450_s5 + $0x10] sm:$0xff]   ;;  %v1163_v4 = vld [vmem:[%s1450_s5 + $0x18] sm:$0xff]   ;;  %v155_v17 = vlaneseq }
  0x39   :  { %1011 = vmatprep.subr.bf16.mxu0 %v1242_v0  ;;  %307 = vmatpush1.bf16.msra.mxu1 %v1114_v18  ;;  %v1164_v5 = vld [vmem:[%s1450_s5 + $0x20] sm:$0xff]   ;;  %v1165_v6 = vld [vmem:[%s1450_s5 + $0x28] sm:$0xff]   ;;  %v1166_v7 = vld [vmem:[%s1450_s5 + $0x30] sm:$0xff]  }
  0x3a   :  { %308 = vmatprep.subr.bf16.mxu1 %v1116_v20  ;;  %v1167_v8 = vld [vmem:[%s1450_s5 + $0x38] sm:$0xff]   ;;  %v1168_v9 = vld [vmem:[%s1451_s6] sm:$0xff]   ;;  %v1169_v10 = vld [vmem:[%s1451_s6 + $0x8] sm:$0xff]   ;;  %v156_v18 = vshrl.u32 %v155_v17, 7 }
  0x3b   :  { %v1170_v11 = vld [vmem:[%s1451_s6 + $0x10] sm:$0xff]   ;;  %v1171_v12 = vld [vmem:[%s1451_s6 + $0x18] sm:$0xff]   ;;  %v153_v20 = vld [vmem:[%s1452_s7 + $0x1] sm:$0x7] }
  0x3c   :  { %1012 = vmatpush3.bf16.msra.mxu0 %v1115_v19  ;;  %v157_v19 = vsub.s32 0, %v156_v18 }
  0x3d   :  { %1013 = vmatprep.subr.bf16.mxu0 %v1242_v0  ;;  %309 = vmatpush1.bf16.msra.mxu1 %v1118_v21  ;;  %v161_v21 = vsub.s32 1, %v156_v18 }
  0x3e   :  { %310 = vmatprep.subr.bf16.mxu1 %v1120_v23 }
  0x40   :  { %1014 = vmatpush3.bf16.msra.mxu0 %v1119_v22  ;;  %v158_v22 = vrot.slane %v153_v20, %v157_v19 }
  0x41   :  { %1015 = vmatprep.subr.bf16.mxu0 %v1242_v0  ;;  %311 = vmatpush1.bf16.msra.mxu1 %v1122_v24  ;;  %v162_v24 = vrot.slane %v153_v20, %v161_v21 }
  0x42   :  { %312 = vmatprep.subr.bf16.mxu1 %v1124_v26 }
  0x44   :  { %1016 = vmatpush3.bf16.msra.mxu0 %v1123_v25 }
  0x45   :  { %1017 = vmatprep.subr.bf16.mxu0 %v1242_v0  ;;  %313 = vmatpush1.bf16.msra.mxu1 %v1126_v27 }
  0x46   :  { %540 = vmatprep.subr.bf16.mxu1 %v1130_v29 }
  0x48   :  { %1018 = vmatpush3.bf16.msra.mxu0 %v1127_v28 }
  0x49   :  { %1023 = vmatprep.subr.bf16.mxu0 %v1242_v0 }
  0xfe   :  { %v113_v32 = vpop.f32.mrb[0].mxu0 }
  0xff   :  { %v114_v33 = vadd.f32 %v888_v31, %v113_v32  ;;  %v1001_v34 = vpop.f32.mrb[1].mxu0 }
 0x100   :  { %v116_v35 = vpop.f32.mrb[2].mxu0 }
 0x101   :  { %1176 = vtanh.f32 %v114_v33  ;;  %v1002_v36 = vpop.f32.mrb[3].mxu0 }
 0x10b   :  { %v1177_v37 = vpop.eup %1176 }
 0x10c   :  { %v120_v40 = vpack.c.bf16 %v1177_v37, %v1177_v37 }
 0x10e   :  { %331 = vmatmul.mubr.bf16.vlgmr.msra.gmra.mrb[0].mxu1 %v120_v40  ;;  %1020 = vmatmul.mubr.bf16.vlgmr.msra.gmra.mrb[4].mxu0 %v120_v40  ;;  %v940_v40 = vld [vmem:[%s1452_s7 + $0x4] ss:$0 sm:$0xff] }
 0x10f   :  { %541 = vmatpush1.bf16.msra.mxu1 %v1128_v38  ;;  %1024 = vmatpush3.bf16.msra.mxu0 %v1149_v39  ;;  %v165_v38 = vsub.s32 2, %v156_v18 }
 0x110   :  { %542 = vmatprep.subr.bf16.mxu1 %v1133_v41  ;;  %1025 = vmatprep.subr.bf16.mxu0 %v1242_v0 }
 0x111   :  { %572 = vmatprep.mubr.bf16.mxu1 %v1244_v30  ;;  %1039 = vmatprep.mubr.msk.bf16.mxu0 %vm1243_vm0, %v1242_v0  ;;  %v166_v41 = vrot.slane %v153_v20, %v165_v38 }
 0x113   :  { %543 = vmatpush1.bf16.msra.mxu1 %v1131_v42  ;;  %1026 = vmatpush3.bf16.msra.mxu0 %v1153_v43 }
 0x114   :  { %544 = vmatprep.subr.bf16.mxu1 %v1136_v44  ;;  %1027 = vmatprep.subr.bf16.mxu0 %v1242_v0 }
 0x117   :  { %545 = vmatpush1.bf16.msra.mxu1 %v1134_v45  ;;  %1028 = vmatpush3.bf16.msra.mxu0 %v1154_v46 }
 0x118   :  { %546 = vmatprep.subr.bf16.mxu1 %v1139_v47  ;;  %1029 = vmatprep.subr.bf16.mxu0 %v1242_v0 }
 0x11b   :  { %547 = vmatpush1.bf16.msra.mxu1 %v1137_v48  ;;  %1030 = vmatpush3.bf16.msra.mxu0 %v1155_v49 }
 0x11c   :  { %548 = vmatprep.subr.bf16.mxu1 %v1142_v50  ;;  %1031 = vmatprep.subr.bf16.mxu0 %v1242_v0 }
 0x11f   :  { %549 = vmatpush1.bf16.msra.mxu1 %v1140_v51  ;;  %1032 = vmatpush3.bf16.msra.mxu0 %v1156_v52 }
 0x120   :  { %550 = vmatprep.subr.bf16.mxu1 %v1145_v53  ;;  %1033 = vmatprep.subr.bf16.mxu0 %v1242_v0 }
 0x123   :  { %551 = vmatpush1.bf16.msra.mxu1 %v1143_v54  ;;  %1034 = vmatpush3.bf16.msra.mxu0 %v1157_v55  ;;  %v1172_v55 = vld [vmem:[%s1451_s6 + $0x20] sm:$0xff]  }
 0x124   :  { %552 = vmatprep.subr.bf16.mxu1 %v1148_v56  ;;  %1035 = vmatprep.subr.bf16.mxu0 %v1242_v0  ;;  %v1173_v56 = vld [vmem:[%s1451_s6 + $0x28] sm:$0xff]  }
 0x127   :  { %553 = vmatpush1.bf16.msra.mxu1 %v1146_v57  ;;  %1036 = vmatpush3.bf16.msra.mxu0 %v1158_v58  ;;  %v1174_v57 = vld [vmem:[%s1451_s6 + $0x30] sm:$0xff]   ;;  %v1175_v58 = vld [vmem:[%s1451_s6 + $0x38] sm:$0xff]  }
 0x128   :  { %554 = vmatprep.subr.bf16.mxu1 %v1152_v59  ;;  %1037 = vmatprep.subr.bf16.mxu0 %v1242_v0  ;;  %v941_v59 = vld [vmem:[%s1452_s7 + $0x5] ss:$0 sm:$0xff] }
 0x12b   :  { %555 = vmatpush1.bf16.msra.mxu1 %v1150_v60  ;;  %1038 = vmatpush3.bf16.msra.mxu0 %v1159_v62 }
 0x12c   :  { %1043 = vmatprep.subr.bf16.mxu1 %v1242_v0  ;;  %1063 = vmatprep.subr.bf16.mxu0 %v1242_v0 }
 0x12e   :  { %573 = vmatmul.mubr.bf16.vlgmr.msra.gmra.mrb[0].mxu1 %v379_v63  ;;  %1040 = vmatmul.mubr.bf16.vlgmr.msra.gmra.mrb[8].mxu0 %v379_v63 }
 0x12f   :  { %1059 = vmatprep.mubr.msk.bf16.mxu1 %vm1243_vm0, %v1242_v0  ;;  %1079 = vmatprep.mubr.msk.bf16.mxu0 %vm1243_vm0, %v1242_v0 }
 0x130   :  { %1044 = vmatpush3.bf16.msra.mxu1 %v1160_v1  ;;  %1064 = vmatpush3.bf16.msra.mxu0 %v1168_v9 }
 0x131   :  { %1045 = vmatprep.subr.bf16.mxu1 %v1242_v0  ;;  %1065 = vmatprep.subr.bf16.mxu0 %v1242_v0 }
 0x134   :  { %1046 = vmatpush3.bf16.msra.mxu1 %v1161_v2  ;;  %1066 = vmatpush3.bf16.msra.mxu0 %v1169_v10 }
 0x135   :  { %1047 = vmatprep.subr.bf16.mxu1 %v1242_v0  ;;  %1067 = vmatprep.subr.bf16.mxu0 %v1242_v0 }
 0x138   :  { %1048 = vmatpush3.bf16.msra.mxu1 %v1162_v3  ;;  %1068 = vmatpush3.bf16.msra.mxu0 %v1170_v11 }
 0x139   :  { %1049 = vmatprep.subr.bf16.mxu1 %v1242_v0  ;;  %1069 = vmatprep.subr.bf16.mxu0 %v1242_v0 }
 0x13c   :  { %1050 = vmatpush3.bf16.msra.mxu1 %v1163_v4  ;;  %1070 = vmatpush3.bf16.msra.mxu0 %v1171_v12 }
 0x13d   :  { %1051 = vmatprep.subr.bf16.mxu1 %v1242_v0  ;;  %1071 = vmatprep.subr.bf16.mxu0 %v1242_v0 }
 0x140   :  { %1052 = vmatpush3.bf16.msra.mxu1 %v1164_v5  ;;  %1072 = vmatpush3.bf16.msra.mxu0 %v1172_v55 }
 0x141   :  { %1053 = vmatprep.subr.bf16.mxu1 %v1242_v0  ;;  %1073 = vmatprep.subr.bf16.mxu0 %v1242_v0 }
 0x144   :  { %1054 = vmatpush3.bf16.msra.mxu1 %v1165_v6  ;;  %1074 = vmatpush3.bf16.msra.mxu0 %v1173_v56 }
 0x145   :  { %1055 = vmatprep.subr.bf16.mxu1 %v1242_v0  ;;  %1075 = vmatprep.subr.bf16.mxu0 %v1242_v0 }
 0x148   :  { %1056 = vmatpush3.bf16.msra.mxu1 %v1166_v7  ;;  %1076 = vmatpush3.bf16.msra.mxu0 %v1174_v57 }
 0x149   :  { %1057 = vmatprep.subr.bf16.mxu1 %v1242_v0  ;;  %1077 = vmatprep.subr.bf16.mxu0 %v1242_v0  ;;  %v950_v0 = vld [vmem:[%s1452_s7 + $0x6] ss:$0 sm:$0xff] }
 0x14c   :  { %1058 = vmatpush3.bf16.msra.mxu1 %v1167_v8  ;;  %1078 = vmatpush3.bf16.msra.mxu0 %v1175_v58 }
 0x1e1   :  { %v373_v13 = vpop.f32.mrb[4].mxu0 }
 0x1e2   :  { %v1021_v14 = vpop.f32.mrb[5].mxu0  ;;  %v374_v45 = vadd.f32 %v373_v13, %v166_v41 }
 0x1e3   :  { %v376_v15 = vpop.f32.mrb[6].mxu0 }
 0x1e4   :  { %v1022_v16 = vpop.f32.mrb[7].mxu0 }
 0x201   :  { %v574_v23 = vpop.f32.mrb[0].mxu1  ;;  %v615_v25 = vpop.f32.mrb[8].mxu0 }
 0x202   :  { %v1083_v26 = vadd.f32 %v574_v23, %v158_v22  ;;  %v576_v27 = vpop.f32.mrb[1].mxu1  ;;  %v1041_v28 = vpop.f32.mrb[9].mxu0  ;;  %v642_v43 = vadd.f32 %v940_v40, %v615_v25 }
 0x203   :  { %v578_v29 = vpop.f32.mrb[2].mxu1  ;;  %v618_v30 = vpop.f32.mrb[10].mxu0  ;;  %v1084_v34 = vadd.f32 %v576_v27, %v162_v24 }
 0x204   :  { %v938_v31 = vmul.f32 -1.442695, %v1083_v26  ;;  %v579_v32 = vpop.f32.mrb[3].mxu1  ;;  %v1042_v33 = vpop.f32.mrb[11].mxu0 }
 0x205   :  { %v939_v35 = vmul.f32 -1.442695, %v1084_v34 }
 0x206   :  { %1178 = vpow2.f32 %v938_v31 }
 0x207   :  { %1180 = vpow2.f32 %v939_v35 }
 0x210   :  { %v1179_v36 = vpop.eup %1178 }
 0x211   :  { %v625_v37 = vadd.f32 1.0, %v1179_v36  ;;  %v1181_v39 = vpop.eup %1180 }
 0x212   :  { %v632_v42 = vadd.f32 1.0, %v1181_v39 }
 0x213   :  { %1182 = vrcp.f32 %v625_v37 }
 0x214   :  { %1184 = vrcp.f32 %v632_v42 }
 0x21d   :  { %v1183_v44 = vpop.eup %1182 }
 0x21e   :  { %v643_v46 = vmul.f32 %v1183_v44, %v642_v43  ;;  %v1185_v48 = vpop.eup %1184 }
 0x21f   :  { %v646_v49 = vsub.f32 1.0, %v1185_v48  ;;  %v648_v52 = vmul.f32 %v1185_v48, %v1353_v61 }
 0x220   :  { %v644_v47 = vadd.f32 %v643_v46, %v374_v45 }
 0x222   :  { %1186 = vtanh.f32 %v644_v47 }
 0x22c   :  { %v1187_v50 = vpop.eup %1186 }
 0x22d   :  { %v647_v51 = vmul.f32 %v1187_v50, %v646_v49 }
 0x22f   :  { %v649_v53 = vadd.f32 %v648_v52, %v647_v51 }
 0x231   :  { %650 = vst [vmem:[%s1454_s9] sm:$0xff] %v649_v53  ;;  %v651_v54 = vpack.c.bf16 %v649_v53, %v649_v53 }
 0x233   :  { %1060 = vmatmul.mubr.bf16.vlgmr.msra.gmra.mrb[4].mxu1 %v651_v54 }
 0x306   :  { %v757_v60 = vpop.f32.mrb[4].mxu1 }
 0x307   :  { %v758_v61 = vadd.f32 %v941_v59, %v757_v60  ;;  %v1061_v62 = vpop.f32.mrb[5].mxu1 }
 0x308   :  { %v760_v63 = vpop.f32.mrb[6].mxu1 }
 0x309   :  { %1188 = vtanh.f32 %v758_v61  ;;  %v1062_v1 = vpop.f32.mrb[7].mxu1 }
 0x313   :  { %v1189_v2 = vpop.eup %1188 }
 0x314   :  { %v764_v3 = vpack.c.bf16 %v1189_v2, %v1189_v2 }
 0x316   :  { %1080 = vmatmul.mubr.bf16.vlgmr.msra.gmra.mrb[12].mxu0 %v764_v3 }
 0x3e9   :  { %v870_v4 = vpop.f32.mrb[12].mxu0 }
 0x3ea   :  { %v871_v5 = vadd.f32 %v950_v0, %v870_v4  ;;  %v1081_v6 = vpop.f32.mrb[13].mxu0 }
 0x3eb   :  { %v873_v7 = vpop.f32.mrb[14].mxu0 }
 0x3ec   :  { %877 = vst.msk [vmem:[%s1453_s8] sm:$0xff] %vm876_vm3, %v871_v5  ;;  %v1082_v8 = vpop.f32.mrb[15].mxu0 }
 0x3ed   :  { %886 = vsyncpa [#allocation3], 1 }
 0x3ee   :  { %887 = vsyncpa [#allocation5], 1 }

</bundles_post_ra>
